<compile_context>
chip_gen: v7x
topology: tpu7x:2x2x1
jax: 0.10.0
libtpu: 0.0.40
codegen_flags: <defaults>
</compile_context>

<pallas_src>
import jax
import jax.numpy as jnp
from jax.experimental import pallas as pl
from jax.experimental.pallas import tpu as pltpu

LANE = 128
SUBLANE = 8


def _round_up(x, m):
    return ((x + m - 1) // m) * m


def critic_kernel(s_ref, a_ref, w1s_ref, w1a_ref, b1_ref,
                  w2_ref, b2_ref, wq_ref, bq_ref, q_ref):
    # fc1: fused "concat" -> two bf16 MXU matmuls accumulated in f32.
    s = s_ref[...].astype(jnp.bfloat16)
    a = a_ref[...].astype(jnp.bfloat16)
    h1 = jnp.dot(s, w1s_ref[...], preferred_element_type=jnp.float32)
    h1 = h1 + jnp.dot(a, w1a_ref[...], preferred_element_type=jnp.float32)
    h1 = jnp.maximum(h1 + b1_ref[...], 0.0)                      # (tb, h1p) f32

    # fc2 + relu (128-lane padded -> full-width bf16 MXU pass, f32 accumulate).
    h2 = jnp.dot(h1.astype(jnp.bfloat16), w2_ref[...],
                 preferred_element_type=jnp.float32)
    h2 = jnp.maximum(h2 + b2_ref[...], 0.0)                      # (tb, h2p) f32

    # q head (out_features == 1): compute wq @ h2^T so per-row q values land on
    # the *lane* axis -> the store below is lane-dense (unmasked vst) rather
    # than a (tb, 1) masked-store column.  wq is zero-padded to 8 rows so the
    # MXU sees an aligned (8, h2p) LHS; only row 0 is real.  Kept in f32: the
    # op is tiny and this keeps the head numerically exact.
    qfull = jnp.dot(wq_ref[...], h2.T, preferred_element_type=jnp.float32)
    q = qfull[0:1, :] + bq_ref[...]                               # (1, tb)
    q_ref[...] = q.astype(q_ref.dtype)


def prepare_critic_params(params, input_dims):
    """Split w1 by state/action columns, zero-pad lane dims to 128 (exact), and
    pre-cast the big matmul weights to bf16 (MXU-native on v5e/v6e/v7x)."""
    w1, b1, w2, b2, wq, bq = params
    fc1_dims = w1.shape[1]
    fc2_dims = w2.shape[1]
    h1p = _round_up(fc1_dims, LANE)
    h2p = _round_up(fc2_dims, LANE)

    w1s = jnp.pad(w1[:input_dims], ((0, 0), (0, h1p - fc1_dims))).astype(jnp.bfloat16)
    w1a = jnp.pad(w1[input_dims:], ((0, 0), (0, h1p - fc1_dims))).astype(jnp.bfloat16)
    b1p = jnp.pad(jnp.reshape(b1, (1, fc1_dims)), ((0, 0), (0, h1p - fc1_dims)))
    w2p = jnp.pad(w2, ((0, h1p - fc1_dims), (0, h2p - fc2_dims))).astype(jnp.bfloat16)
    b2p = jnp.pad(jnp.reshape(b2, (1, fc2_dims)), ((0, 0), (0, h2p - fc2_dims)))
    # q head stays f32 (tiny op); padded to 8 sublanes for an aligned MXU LHS.
    wqp = jnp.pad(jnp.reshape(wq, (1, fc2_dims)),
                  ((0, SUBLANE - 1), (0, h2p - fc2_dims)))
    bqp = jnp.reshape(bq, (1, 1)).astype(jnp.float32)
    return (w1s, w1a, b1p, w2p, b2p, wqp, bqp)


def critic_forward(state, action, prepared_params, *, block_batch=2048):
    """state: [B, input_dims], action: [B, n_agents*n_actions] -> q: [B, 1].

    state/action may be f32 or bf16 (bf16 upstream halves the streamed bytes)."""
    w1s, w1a, b1, w2, b2, wq, bq = prepared_params
    B, in_dims = state.shape
    act_dims = action.shape[1]
    h1p = w1s.shape[1]
    h2p = w2.shape[1]

    # Batch tile: multiple of 128 (lane-dense output rows), large enough to
    # amortize the ~0.35us/grid-step overhead, small enough that batches of
    # >= 2*128 rows produce >= 2 grid steps (both v7x TensorCores busy).
    block_batch = max(LANE, _round_up(block_batch, LANE))
    tb = min(block_batch, max(LANE, _round_up(pl.cdiv(B, 2), LANE)))
    n_tiles = pl.cdiv(B, tb)
    b_pad = n_tiles * tb

    # Only pad when the entire batch is smaller than a single tile (cheap).
    # Otherwise the last, partial tile relies on Pallas' out-of-bounds block
    # handling: garbage rows get computed but their q values are sliced off.
    if B < tb:
        state = jnp.pad(state, ((0, tb - B), (0, 0)))
        action = jnp.pad(action, ((0, tb - B), (0, 0)))

    flops = 2 * b_pad * ((in_dims + act_dims) * h1p + h1p * h2p + SUBLANE * h2p)
    bytes_accessed = (
        state.dtype.itemsize * b_pad * in_dims
        + action.dtype.itemsize * b_pad * act_dims
        + 4 * b_pad                                        # q output
        + 2 * ((in_dims + act_dims) * h1p + h1p * h2p)     # bf16 weights
        + 4 * (h1p + h2p + SUBLANE * h2p + 1))             # f32 biases + wq

    q_tiles = pl.pallas_call(
        critic_kernel,
        out_shape=jax.ShapeDtypeStruct((n_tiles, 1, tb), jnp.float32),
        grid=(n_tiles,),
        in_specs=[
            pl.BlockSpec((tb, in_dims), lambda i: (i, 0)),
            pl.BlockSpec((tb, act_dims), lambda i: (i, 0)),
            # Weights/biases: constant index_map -> fetched once, not per step.
            pl.BlockSpec(w1s.shape, lambda i: (0, 0)),
            pl.BlockSpec(w1a.shape, lambda i: (0, 0)),
            pl.BlockSpec(b1.shape, lambda i: (0, 0)),
            pl.BlockSpec(w2.shape, lambda i: (0, 0)),
            pl.BlockSpec(b2.shape, lambda i: (0, 0)),
            pl.BlockSpec(wq.shape, lambda i: (0, 0)),
            pl.BlockSpec(bq.shape, lambda i: (0, 0)),
        ],
        # Lane-dense output: one (1, tb) lane-major row of q values per step.
        out_specs=pl.BlockSpec((None, 1, tb), lambda i: (i, 0, 0)),
        compiler_params=pltpu.CompilerParams(
            dimension_semantics=("parallel",)),
        cost_estimate=pl.CostEstimate(
            flops=flops, transcendentals=0, bytes_accessed=bytes_accessed),
    )(state, action, w1s, w1a, b1, w2, b2, wq, bq)

    q = q_tiles.reshape(b_pad)
    if b_pad != B:
        q = q[:B]
    return q.reshape(B, 1)


def reference_forward(state, action, raw_params, *, bf16_matmuls=True):
    """Pure-JAX reference.  bf16_matmuls=True mirrors the kernel's numerics
    (bf16 MXU inputs, f32 accumulation); False is the original f32 forward."""
    w1, b1, w2, b2, wq, bq = raw_params
    c = (lambda t: t.astype(jnp.bfloat16)) if bf16_matmuls else (lambda t: t)
    x = jnp.concatenate([state, action], axis=1)
    h1 = jnp.maximum(
        jnp.dot(c(x), c(w1), preferred_element_type=jnp.float32) + b1, 0.0)
    h2 = jnp.maximum(
        jnp.dot(c(h1), c(w2), preferred_element_type=jnp.float32) + b2, 0.0)
    return jnp.dot(h2, wq) + bq


def init_linear(key, fan_in, fan_out):
    """Deterministic init mimicking torch.nn.Linear default U(-1/sqrt(fan_in), +)."""
    kw, kb = jax.random.split(key)
    bound = 1.0 / jnp.sqrt(float(fan_in))
    # stored as [in, out] so the kernel does x @ w
    w = jax.random.uniform(kw, (fan_in, fan_out), jnp.float32, -bound, bound)
    b = jax.random.uniform(kb, (1, fan_out), jnp.float32, -bound, bound)
    return w, b


if __name__ == "__main__":
    # Small shapes consistent with the module's constructor.
    batch = 8
    input_dims = 16
    n_agents = 2
    n_actions = 4
    fc1_dims = 32
    fc2_dims = 32
    cat_dims = input_dims + n_agents * n_actions  # 24

    key = jax.random.PRNGKey(0)
    k_state, k_action, k1, k2, k3 = jax.random.split(key, 5)

    state = jax.random.normal(k_state, (batch, input_dims), jnp.float32)
    action = jax.random.normal(k_action, (batch, n_agents * n_actions), jnp.float32)

    w1, b1 = init_linear(k1, cat_dims, fc1_dims)
    w2, b2 = init_linear(k2, fc1_dims, fc2_dims)
    wq, bq = init_linear(k3, fc2_dims, 1)
    raw_params = (w1, b1, w2, b2, wq, bq)

    prepared = prepare_critic_params(raw_params, input_dims)
    q = critic_forward(state, action, prepared)
    q = jax.block_until_ready(q)
    assert q.shape == (batch, 1)

    # Tight check against a reference that mirrors the kernel's bf16/f32 math.
    ref_matched = reference_forward(state, action, raw_params, bf16_matmuls=True)
    assert jnp.allclose(q, ref_matched, atol=1e-2, rtol=1e-2), (
        float(jnp.max(jnp.abs(q - ref_matched))))
    # Looser check against the original full-f32 PyTorch-semantics forward.
    ref_f32 = reference_forward(state, action, raw_params, bf16_matmuls=False)
    assert jnp.allclose(q, ref_f32, atol=5e-2, rtol=5e-2), (
        float(jnp.max(jnp.abs(q - ref_f32))))

    print("KERNEL_OK")
</pallas_src>

<mosaic_0001>
module attributes {stable_mosaic.version = 11 : i64} {
  func.func @critic_kernel(%arg0: i32, %arg1: memref<128x16xf32, #tpu.memory_space<vmem>>, %arg2: memref<128x8xf32, #tpu.memory_space<vmem>>, %arg3: memref<16x128xbf16, #tpu.memory_space<vmem>>, %arg4: memref<8x128xbf16, #tpu.memory_space<vmem>>, %arg5: memref<1x128xf32, #tpu.memory_space<vmem>>, %arg6: memref<128x128xbf16, #tpu.memory_space<vmem>>, %arg7: memref<1x128xf32, #tpu.memory_space<vmem>>, %arg8: memref<8x128xf32, #tpu.memory_space<vmem>>, %arg9: memref<1x1xf32, #tpu.memory_space<vmem>>, %arg10: memref<1x1x128xf32, #tpu.memory_space<vmem>>) attributes {dimension_semantics = [#tpu.dimension_semantics<parallel>], iteration_bounds = array<i64: 1>, scalar_prefetch = 0 : i64, scratch_operands = 0 : i64, tpu.core_type = #tpu.core_type<tc>, window_params = [{transform_indices = @transform_0, window_bounds = array<i64: 128, 16>}, {transform_indices = @transform_1, window_bounds = array<i64: 128, 8>}, {pipeline_mode = #tpu.pipeline_mode<synchronous>, transform_indices = @transform_2, window_bounds = array<i64: 16, 128>}, {pipeline_mode = #tpu.pipeline_mode<synchronous>, transform_indices = @transform_3, window_bounds = array<i64: 8, 128>}, {pipeline_mode = #tpu.pipeline_mode<synchronous>, transform_indices = @transform_4, window_bounds = array<i64: 1, 128>}, {pipeline_mode = #tpu.pipeline_mode<synchronous>, transform_indices = @transform_5, window_bounds = array<i64: 128, 128>}, {pipeline_mode = #tpu.pipeline_mode<synchronous>, transform_indices = @transform_6, window_bounds = array<i64: 1, 128>}, {pipeline_mode = #tpu.pipeline_mode<synchronous>, transform_indices = @transform_7, window_bounds = array<i64: 8, 128>}, {pipeline_mode = #tpu.pipeline_mode<synchronous>, transform_indices = @transform_8, window_bounds = array<i64: 1, 1>}, {transform_indices = @transform_9, window_bounds = array<i64: 1, 1, 128>}]} {
    %c0 = arith.constant 0 : index
    %c0_0 = arith.constant 0 : index
    %0 = vector.load %arg1[%c0, %c0_0] : memref<128x16xf32, #tpu.memory_space<vmem>>, vector<128x16xf32>
    %1 = arith.truncf %0 : vector<128x16xf32> to vector<128x16xbf16>
    %c0_1 = arith.constant 0 : index
    %c0_2 = arith.constant 0 : index
    %2 = vector.load %arg2[%c0_1, %c0_2] : memref<128x8xf32, #tpu.memory_space<vmem>>, vector<128x8xf32>
    %3 = arith.truncf %2 : vector<128x8xf32> to vector<128x8xbf16>
    %c0_3 = arith.constant 0 : index
    %c0_4 = arith.constant 0 : index
    %4 = vector.load %arg3[%c0_3, %c0_4] : memref<16x128xbf16, #tpu.memory_space<vmem>>, vector<16x128xbf16>
    %cst = arith.constant dense<0.000000e+00> : vector<128x128xf32>
    %5 = tpu.matmul %1, %4, %cst {dimension_numbers = #tpu.dot_dimension_numbers<[1], [0], [0], [1], [0, 0, 1, 1], [], []>} : vector<128x16xbf16>, vector<16x128xbf16>, vector<128x128xf32> -> vector<128x128xf32>
    %c0_5 = arith.constant 0 : index
    %c0_6 = arith.constant 0 : index
    %6 = vector.load %arg4[%c0_5, %c0_6] : memref<8x128xbf16, #tpu.memory_space<vmem>>, vector<8x128xbf16>
    %cst_7 = arith.constant dense<0.000000e+00> : vector<128x128xf32>
    %7 = tpu.matmul %3, %6, %cst_7 {dimension_numbers = #tpu.dot_dimension_numbers<[1], [0], [0], [1], [0, 0, 1, 1], [], []>} : vector<128x8xbf16>, vector<8x128xbf16>, vector<128x128xf32> -> vector<128x128xf32>
    %8 = arith.addf %5, %7 : vector<128x128xf32>
    %c0_8 = arith.constant 0 : index
    %c0_9 = arith.constant 0 : index
    %9 = vector.load %arg5[%c0_8, %c0_9] : memref<1x128xf32, #tpu.memory_space<vmem>>, vector<1x128xf32>
    %10 = vector.broadcast %9 : vector<1x128xf32> to vector<128x128xf32>
    %11 = arith.addf %8, %10 : vector<128x128xf32>
    %cst_10 = arith.constant 0.000000e+00 : f32
    %12 = vector.broadcast %cst_10 : f32 to vector<128x128xf32>
    %13 = arith.maximumf %11, %12 : vector<128x128xf32>
    %14 = arith.truncf %13 : vector<128x128xf32> to vector<128x128xbf16>
    %c0_11 = arith.constant 0 : index
    %c0_12 = arith.constant 0 : index
    %15 = vector.load %arg6[%c0_11, %c0_12] : memref<128x128xbf16, #tpu.memory_space<vmem>>, vector<128x128xbf16>
    %cst_13 = arith.constant dense<0.000000e+00> : vector<128x128xf32>
    %16 = tpu.matmul %14, %15, %cst_13 {dimension_numbers = #tpu.dot_dimension_numbers<[1], [0], [0], [1], [0, 0, 1, 1], [], []>} : vector<128x128xbf16>, vector<128x128xbf16>, vector<128x128xf32> -> vector<128x128xf32>
    %c0_14 = arith.constant 0 : index
    %c0_15 = arith.constant 0 : index
    %17 = vector.load %arg7[%c0_14, %c0_15] : memref<1x128xf32, #tpu.memory_space<vmem>>, vector<1x128xf32>
    %18 = vector.broadcast %17 : vector<1x128xf32> to vector<128x128xf32>
    %19 = arith.addf %16, %18 : vector<128x128xf32>
    %cst_16 = arith.constant 0.000000e+00 : f32
    %20 = vector.broadcast %cst_16 : f32 to vector<128x128xf32>
    %21 = arith.maximumf %19, %20 : vector<128x128xf32>
    %c0_17 = arith.constant 0 : index
    %c0_18 = arith.constant 0 : index
    %22 = vector.load %arg8[%c0_17, %c0_18] : memref<8x128xf32, #tpu.memory_space<vmem>>, vector<8x128xf32>
    %23 = tpu.transpose %21, [1, 0] : vector<128x128xf32> -> vector<128x128xf32>
    %cst_19 = arith.constant dense<0.000000e+00> : vector<8x128xf32>
    %24 = tpu.matmul %22, %23, %cst_19 {dimension_numbers = #tpu.dot_dimension_numbers<[1], [0], [0], [1], [0, 0, 1, 1], [], []>} : vector<8x128xf32>, vector<128x128xf32>, vector<8x128xf32> -> vector<8x128xf32>
    %25 = vector.extract_strided_slice %24 {offsets = [0, 0], sizes = [1, 128], strides = [1, 1]} : vector<8x128xf32> to vector<1x128xf32>
    %c0_20 = arith.constant 0 : index
    %c0_21 = arith.constant 0 : index
    %26 = vector.load %arg9[%c0_20, %c0_21] : memref<1x1xf32, #tpu.memory_space<vmem>>, vector<1x1xf32>
    %27 = vector.broadcast %26 : vector<1x1xf32> to vector<1x128xf32>
    %28 = arith.addf %25, %27 : vector<1x128xf32>
    %c0_22 = arith.constant 0 : index
    %c0_23 = arith.constant 0 : index
    %c0_24 = arith.constant 0 : index
    %29 = vector.load %arg10[%c0_22, %c0_23, %c0_24] : memref<1x1x128xf32, #tpu.memory_space<vmem>>, vector<1x1x128xf32>
    %30 = vector.shape_cast %29 : vector<1x1x128xf32> to vector<1x128xf32>
    %31 = vector.shape_cast %28 : vector<1x128xf32> to vector<1x1x128xf32>
    tpu.vector_store %arg10[%c0_22, %c0_23, %c0_24], %31 {strides = array<i32>} : memref<1x1x128xf32, #tpu.memory_space<vmem>>, vector<1x1x128xf32>,
    return
  }
  func.func @transform_0(%arg0: i32) -> (i32, i32) {
    %c0_i32 = arith.constant 0 : i32
    %c0_i32_0 = arith.constant 0 : i32
    return %arg0, %c0_i32 : i32, i32
  }
  func.func @transform_1(%arg0: i32) -> (i32, i32) {
    %c0_i32 = arith.constant 0 : i32
    %c0_i32_0 = arith.constant 0 : i32
    return %arg0, %c0_i32 : i32, i32
  }
  func.func @transform_2(%arg0: i32) -> (i32, i32) {
    %c0_i32 = arith.constant 0 : i32
    %c0_i32_0 = arith.constant 0 : i32
    %c0_i32_1 = arith.constant 0 : i32
    return %c0_i32, %c0_i32_0 : i32, i32
  }
  func.func @transform_3(%arg0: i32) -> (i32, i32) {
    %c0_i32 = arith.constant 0 : i32
    %c0_i32_0 = arith.constant 0 : i32
    %c0_i32_1 = arith.constant 0 : i32
    return %c0_i32, %c0_i32_0 : i32, i32
  }
  func.func @transform_4(%arg0: i32) -> (i32, i32) {
    %c0_i32 = arith.constant 0 : i32
    %c0_i32_0 = arith.constant 0 : i32
    %c0_i32_1 = arith.constant 0 : i32
    return %c0_i32, %c0_i32_0 : i32, i32
  }
  func.func @transform_5(%arg0: i32) -> (i32, i32) {
    %c0_i32 = arith.constant 0 : i32
    %c0_i32_0 = arith.constant 0 : i32
    %c0_i32_1 = arith.constant 0 : i32
    return %c0_i32, %c0_i32_0 : i32, i32
  }
  func.func @transform_6(%arg0: i32) -> (i32, i32) {
    %c0_i32 = arith.constant 0 : i32
    %c0_i32_0 = arith.constant 0 : i32
    %c0_i32_1 = arith.constant 0 : i32
    return %c0_i32, %c0_i32_0 : i32, i32
  }
  func.func @transform_7(%arg0: i32) -> (i32, i32) {
    %c0_i32 = arith.constant 0 : i32
    %c0_i32_0 = arith.constant 0 : i32
    %c0_i32_1 = arith.constant 0 : i32
    return %c0_i32, %c0_i32_0 : i32, i32
  }
  func.func @transform_8(%arg0: i32) -> (i32, i32) {
    %c0_i32 = arith.constant 0 : i32
    %c0_i32_0 = arith.constant 0 : i32
    %c0_i32_1 = arith.constant 0 : i32
    return %c0_i32, %c0_i32_0 : i32, i32
  }
  func.func @transform_9(%arg0: i32) -> (i32, i32, i32) {
    %c0_i32 = arith.constant 0 : i32
    %c0_i32_0 = arith.constant 0 : i32
    %c0_i32_1 = arith.constant 0 : i32
    return %arg0, %c0_i32, %c0_i32_0 : i32, i32, i32
  }
}

</mosaic_0001>

<bundles_post_ra>
// kernel: tpu_custom_call.1
= control target key start
LH: loop header
LB: loop body
LE: loop exit
PB: predicated region body
PF: predicated region fallthrough
CT: control target
= control target key end

     0   :  { %s1159_s0 = inlined_call_operand.vmem [shape: f32[128,16], index: 0, kind: input, shape index: {}]   ;;  %s1160_s1 = inlined_call_operand.vmem [shape: f32[128,8], index: 1, kind: input, shape index: {}]   ;;  %s1161_s2 = inlined_call_operand.vmem [shape: bf16[16,128], index: 2, kind: input, shape index: {}]   ;;  %s1162_s3 = inlined_call_operand.vmem [shape: bf16[8,128], index: 3, kind: input, shape index: {}]   ;;  %s1163_s4 = inlined_call_operand.vmem [shape: f32[1,128], index: 4, kind: input, shape index: {}]   ;;  %s1164_s5 = inlined_call_operand.vmem [shape: bf16[128,128], index: 5, kind: input, shape index: {}]   ;;  %s1165_s6 = inlined_call_operand.vmem [shape: f32[1,128], index: 6, kind: input, shape index: {}]   ;;  %s1166_s7 = inlined_call_operand.vmem [shape: f32[8,128], index: 7, kind: input, shape index: {}]   ;;  %s1167_s8 = inlined_call_operand.<no memory space> [shape: f32[1,1], index: 8, kind: input, shape index: {}]   ;;  %s1168_s9 = inlined_call_operand.hbm [shape: f32[1,1,128], index: 9, kind: output, shape index: {}]  }
   0x1   :  { %v14_v0 = vstv %s1167_s8 }
   0x2   :  { %15 = vst [vmem:[#allocation2] sm:$0x1] %v14_v0 }
   0x3   :  { %v86_v1 = vld [vmem:[%s1162_s3] sm:$0xf]  ;;  %vm112_vm0 = vcmask 1043456   ;;  %v61_v3 = vld [vmem:[%s1160_s1 + $0x8] sm:$0xff]  ;;  %vm87_vm1 = vcmask 64512   ;;  %v62_v6 = vld [vmem:[%s1160_s1 + $0x10] sm:$0xff] }
   0x4   :  { %v60_v2 = vld [vmem:[%s1160_s1] sm:$0xff]  ;;  %890 = vmatprep.subr.msk.bf16.mxu0 %vm112_vm0, %v86_v1  ;;  %v114_v4 = vsel %vm112_vm0, %v86_v1, 0  ;;  %v63_v7 = vld [vmem:[%s1160_s1 + $0x18] sm:$0xff]  ;;  %v65_v11 = vld [vmem:[%s1160_s1 + $0x28] sm:$0xff] }
   0x5   :  { %v76_v5 = vpack.c.bf16 %v61_v3, %v60_v2  ;;  %748 = vmatpush3.bf16.msra.mxu0 %v114_v4  ;;  %v77_v8 = vpack.c.bf16 %v63_v7, %v62_v6  ;;  %v897_v9 = vld [vmem:[%s1161_s2] sm:$0xff]   ;;  %v66_v13 = vld [vmem:[%s1160_s1 + $0x30] sm:$0xff]  ;;  %v67_v14 = vld [vmem:[%s1160_s1 + $0x38] sm:$0xff] }
   0x6   :  { %v64_v10 = vld [vmem:[%s1160_s1 + $0x20] sm:$0xff]  ;;  %765 = vmatprep.subr.bf16.mxu0 %v897_v9  ;;  %v69_v16 = vld [vmem:[%s1160_s1 + $0x48] sm:$0xff]  ;;  %v79_v17 = vpack.c.bf16 %v67_v14, %v66_v13  ;;  %v70_v19 = vld [vmem:[%s1160_s1 + $0x50] sm:$0xff] }
   0x7   :  { %749 = vmatprep.mubr.msk.bf16.mxu0 %vm87_vm1, %v76_v5  ;;  %v78_v12 = vpack.c.bf16 %v65_v11, %v64_v10  ;;  %v68_v15 = vld [vmem:[%s1160_s1 + $0x40] sm:$0xff]  ;;  %v71_v20 = vld [vmem:[%s1160_s1 + $0x58] sm:$0xff]  ;;  %v899_v22 = vld [vmem:[%s1164_s5 + $0x8] sm:$0xff]  }
   0x8   :  { %750 = vmatmul.mubr.msk.bf16.vlgmr.msra.gmra.mrb[0].mxu0 %vm87_vm1, %v77_v8  ;;  %v80_v18 = vpack.c.bf16 %v69_v16, %v68_v15  ;;  %v898_v21 = vld [vmem:[%s1164_s5] sm:$0xff]   ;;  %v73_v24 = vld [vmem:[%s1160_s1 + $0x68] sm:$0xff]  ;;  %v900_v25 = vld [vmem:[%s1164_s5 + $0x10] sm:$0xff]   ;;  %v81_v26 = vpack.c.bf16 %v71_v20, %v70_v19 }
   0x9   :  { %766 = vmatpush3.bf16.msra.mxu0 %v897_v9  ;;  %753 = vmatprep.mubr.msk.bf16.mxu0 %vm87_vm1, %v78_v12  ;;  %v72_v23 = vld [vmem:[%s1160_s1 + $0x60] sm:$0xff] }
   0xa   :  { %783 = vmatprep.subr.bf16.mxu1 %v898_v21  ;;  %v82_v27 = vpack.c.bf16 %v73_v24, %v72_v23 }
   0xb   :  { %784 = vmatpush3.bf16.msra.mxu1 %v898_v21 }
   0xc   :  { %785 = vmatprep.subr.bf16.mxu1 %v899_v22 }
   0xf   :  { %786 = vmatpush3.bf16.msra.mxu1 %v899_v22 }
  0x10   :  { %754 = vmatmul.mubr.msk.bf16.gmra.mrb[4].mxu0 %vm87_vm1, %v79_v17 }
  0x11   :  { %757 = vmatprep.mubr.msk.bf16.mxu0 %vm87_vm1, %v80_v18 }
  0x12   :  { %16 = vsyncpa [#allocation4], 0  ;;  %787 = vmatprep.subr.bf16.mxu1 %v900_v25  ;;  %v901_v28 = vld [vmem:[%s1164_s5 + $0x18] sm:$0xff]   ;;  %v74_v29 = vld [vmem:[%s1160_s1 + $0x70] sm:$0xff]  ;;  %vm219_vm2 = vcmask 130048   ;;  %vm931_vm3 = vmmov 0  }
  0x13   :  { %v75_v30 = vld [vmem:[%s1160_s1 + $0x78] sm:$0xff]  ;;  %v36_v31 = vld [vmem:[%s1159_s0] sm:$0xff]  ;;  %v37_v32 = vld [vmem:[%s1159_s0 + $0x8] sm:$0xff]  ;;  %788 = vmatpush3.bf16.msra.mxu1 %v900_v25  ;;  %s934_s21 = smov [#allocation3]  }
  0x14   :  { %789 = vmatprep.subr.bf16.mxu1 %v901_v28  ;;  %v902_v33 = vld [vmem:[%s1164_s5 + $0x20] sm:$0xff]   ;;  %v83_v34 = vpack.c.bf16 %v75_v30, %v74_v29  ;;  %v52_v35 = vpack.c.bf16 %v37_v32, %v36_v31  ;;  %v903_v36 = vld [vmem:[%s1164_s5 + $0x28] sm:$0xff]   ;;  %v38_v37 = vld [vmem:[%s1159_s0 + $0x10] sm:$0xff]  ;;  %s661_s22 = sshll.u32 %s934_s21, 4  ;;  %s662_s22 = int_to_ptr.vmem [resolvable:$true] %s661_s22 }
  0x15   :  { %v39_v38 = vld [vmem:[%s1159_s0 + $0x18] sm:$0xff]  ;;  %v40_v39 = vld [vmem:[%s1159_s0 + $0x20] sm:$0xff]  ;;  %v41_v40 = vld [vmem:[%s1159_s0 + $0x28] sm:$0xff]  ;;  %s906_s23 = scalar_lea.vmem %s662_s22, 16  ;;  %s910_s24 = scalar_lea.vmem %s662_s22, 32 }
  0x16   :  { %v53_v41 = vpack.c.bf16 %v39_v38, %v38_v37  ;;  %v54_v42 = vpack.c.bf16 %v41_v40, %v40_v39  ;;  %v42_v43 = vld [vmem:[%s1159_s0 + $0x30] sm:$0xff]  ;;  %v43_v44 = vld [vmem:[%s1159_s0 + $0x38] sm:$0xff]  ;;  %v44_v45 = vld [vmem:[%s1159_s0 + $0x40] sm:$0xff]  ;;  %p907_p0 = scmp.ne.s32.totalorder %s662_s22, %s906_s23  ;;  %p911_p1 = scmp.lt.s32.totalorder %s662_s22, %s662_s22 }
  0x17   :  { %790 = vmatpush3.bf16.msra.mxu1 %v901_v28  ;;  %v45_v46 = vld [vmem:[%s1159_s0 + $0x48] sm:$0xff]  ;;  %v55_v47 = vpack.c.bf16 %v43_v44, %v42_v43  ;;  %v46_v49 = vld [vmem:[%s1159_s0 + $0x50] sm:$0xff]  ;;  %v47_v50 = vld [vmem:[%s1159_s0 + $0x58] sm:$0xff]  ;;  %p912_p2 = scmp.lt.s32.totalorder %s910_s24, %s906_s23 }
  0x18   :  { %758 = vmatmul.mubr.msk.bf16.gmra.mrb[8].mxu0 %vm87_vm1, %v81_v26  ;;  %791 = vmatprep.subr.bf16.mxu1 %v902_v33  ;;  %v56_v48 = vpack.c.bf16 %v45_v46, %v44_v45  ;;  %v48_v51 = vld [vmem:[%s1159_s0 + $0x60] sm:$0xff]  ;;  %v49_v52 = vld [vmem:[%s1159_s0 + $0x68] sm:$0xff]  ;;  %v57_v53 = vpack.c.bf16 %v47_v50, %v46_v49  ;;  %v50_v55 = vld [vmem:[%s1159_s0 + $0x70] sm:$0xff] }
  0x19   :  { %761 = vmatprep.mubr.msk.bf16.mxu0 %vm87_vm1, %v82_v27  ;;  %v58_v54 = vpack.c.bf16 %v49_v52, %v48_v51  ;;  %v51_v56 = vld [vmem:[%s1159_s0 + $0x78] sm:$0xff]  ;;  %v904_v58 = vld [vmem:[%s1164_s5 + $0x30] sm:$0xff]   ;;  %v686_v60 = vld [vmem:[%s1163_s4] ss:$0 sm:$0xff]  ;;  %p913_p3 = por %p912_p2, %p911_p1 }
  0x1a   :  { %v59_v57 = vpack.c.bf16 %v51_v56, %v50_v55  ;;  %v905_v59 = vld [vmem:[%s1164_s5 + $0x38] sm:$0xff]   ;;  %v643_v55 = vld [vmem:[#allocation2] sm:$0x1]  ;;  %v933_v56 = vmov 0  }
  0x1b   :  { %792 = vmatpush3.bf16.msra.mxu1 %v902_v33  ;;  %896 = vset.pattern.permute.xlu0 %v933_v56  ;;  %p914_p4 = pnand %p913_p3, %p907_p0 }
  0x1c   :  { %793 = vmatprep.subr.bf16.mxu1 %v903_v36  ;;  %646 = vperm.xlu0 %896, %v643_v55  }
  0x1f   :  { %794 = vmatpush3.bf16.msra.mxu1 %v903_v36 }
  0x20   :  { %762 = vmatmul.mubr.msk.bf16.gmra.mrb[12].mxu0 %vm87_vm1, %v83_v34  ;;  %795 = vmatprep.subr.bf16.mxu1 %v904_v58 }
  0x21   :  { %767 = vmatprep.mubr.msk.bf16.mxu0 %vm219_vm2, %v52_v35 }
  0x23   :  { %796 = vmatpush3.bf16.msra.mxu1 %v904_v58 }
  0x24   :  { %797 = vmatprep.subr.bf16.mxu1 %v905_v59 }
  0x27   :  { %798 = vmatpush3.bf16.msra.mxu1 %v905_v59 }
  0x28   :  { %768 = vmatmul.mubr.msk.bf16.vlgmr.msra.gmra.mrb[0].mxu0 %vm219_vm2, %v53_v41 }
  0x29   :  { %771 = vmatprep.mubr.msk.bf16.mxu0 %vm219_vm2, %v54_v42 }
  0x30   :  { %772 = vmatmul.mubr.msk.bf16.gmra.mrb[4].mxu0 %vm219_vm2, %v55_v47 }
  0x31   :  { %775 = vmatprep.mubr.msk.bf16.mxu0 %vm219_vm2, %v56_v48 }
  0x38   :  { %776 = vmatmul.mubr.msk.bf16.gmra.mrb[8].mxu0 %vm219_vm2, %v57_v53  ;;  %v930_v53 = vmov 0.0|0.0  }
  0x39   :  { %779 = vmatprep.mubr.msk.bf16.mxu0 %vm219_vm2, %v58_v54  ;;  %850 = vmatprep.subr.bf16.mxu1 %v930_v53  ;;  %v932_v54 = vmov 0.0  }
  0x40   :  { %780 = vmatmul.mubr.msk.bf16.gmra.mrb[12].mxu0 %vm219_vm2, %v59_v57  ;;  %v687_v57 = vld [vmem:[%s1165_s6] ss:$0 sm:$0xff] }
  0x9b   :  { %v647_v55 = vpop.permute.xlu0 %646 }
  0xfb   :  { %v769_v61 = vpop.f32.mrb[0].mxu0 }
  0xfc   :  { %v350_v62 = vadd.f32 %v769_v61, %v686_v60  ;;  %v278_v63 = vpop.f32.mrb[1].mxu0 }
  0xfd   :  { %v348_v0 = vadd.f32 %v686_v60, %v278_v63  ;;  %v770_v1 = vpop.f32.mrb[2].mxu0 }
  0xfe   :  { %v351_v2 = vadd.f32 %v770_v1, %v686_v60  ;;  %v281_v3 = vpop.f32.mrb[3].mxu0  ;;  %v366_v5 = vmax.f32 %v350_v62, 0.0 }
  0xff   :  { %v349_v4 = vadd.f32 %v686_v60, %v281_v3  ;;  %v364_v7 = vmax.f32 %v348_v0, 0.0 }
 0x100   :  { %v367_v6 = vmax.f32 %v351_v2, 0.0 }
 0x101   :  { %v365_v8 = vmax.f32 %v349_v4, 0.0 }
 0x102   :  { %v381_v9 = vpack.c.bf16 %v367_v6, %v366_v5 }
 0x103   :  { %v773_v10 = vpop.f32.mrb[4].mxu0  ;;  %v380_v11 = vpack.c.bf16 %v365_v8, %v364_v7 }
 0x104   :  { %v354_v12 = vadd.f32 %v773_v10, %v686_v60  ;;  %v294_v13 = vpop.f32.mrb[5].mxu0 }
 0x105   :  { %v352_v14 = vadd.f32 %v686_v60, %v294_v13  ;;  %v774_v15 = vpop.f32.mrb[6].mxu0  ;;  %799 = vmatprep.mubr.bf16.mxu1 %v380_v11 }
 0x106   :  { %v355_v16 = vadd.f32 %v774_v15, %v686_v60  ;;  %v297_v17 = vpop.f32.mrb[7].mxu0  ;;  %800 = vmatmul.mubr.bf16.vlgmr.msra.gmra.mrb[0].mxu1 %v381_v9  ;;  %v370_v19 = vmax.f32 %v354_v12, 0.0 }
 0x107   :  { %v353_v18 = vadd.f32 %v686_v60, %v297_v17  ;;  %v368_v21 = vmax.f32 %v352_v14, 0.0 }
 0x108   :  { %v371_v20 = vmax.f32 %v355_v16, 0.0 }
 0x109   :  { %v369_v22 = vmax.f32 %v353_v18, 0.0 }
 0x10a   :  { %v383_v23 = vpack.c.bf16 %v371_v20, %v370_v19 }
 0x10b   :  { %v382_v24 = vpack.c.bf16 %v369_v22, %v368_v21  ;;  %v777_v25 = vpop.f32.mrb[8].mxu0 }
 0x10c   :  { %v358_v26 = vadd.f32 %v777_v25, %v686_v60  ;;  %v310_v27 = vpop.f32.mrb[9].mxu0 }
 0x10d   :  { %v356_v28 = vadd.f32 %v686_v60, %v310_v27  ;;  %v778_v29 = vpop.f32.mrb[10].mxu0  ;;  %803 = vmatprep.mubr.bf16.mxu1 %v382_v24 }
 0x10e   :  { %v359_v30 = vadd.f32 %v778_v29, %v686_v60  ;;  %v313_v31 = vpop.f32.mrb[11].mxu0  ;;  %804 = vmatmul.mubr.bf16.gmra.mrb[4].mxu1 %v383_v23  ;;  %v374_v33 = vmax.f32 %v358_v26, 0.0 }
 0x10f   :  { %v357_v32 = vadd.f32 %v686_v60, %v313_v31  ;;  %v372_v35 = vmax.f32 %v356_v28, 0.0 }
 0x110   :  { %v375_v34 = vmax.f32 %v359_v30, 0.0 }
 0x111   :  { %v373_v36 = vmax.f32 %v357_v32, 0.0 }
 0x112   :  { %v385_v37 = vpack.c.bf16 %v375_v34, %v374_v33 }
 0x113   :  { %v384_v38 = vpack.c.bf16 %v373_v36, %v372_v35  ;;  %v781_v39 = vpop.f32.mrb[12].mxu0 }
 0x114   :  { %v362_v40 = vadd.f32 %v781_v39, %v686_v60  ;;  %v326_v41 = vpop.f32.mrb[13].mxu0 }
 0x115   :  { %v360_v42 = vadd.f32 %v686_v60, %v326_v41  ;;  %v782_v43 = vpop.f32.mrb[14].mxu0  ;;  %807 = vmatprep.mubr.bf16.mxu1 %v384_v38 }
 0x116   :  { %v363_v44 = vadd.f32 %v782_v43, %v686_v60  ;;  %v329_v45 = vpop.f32.mrb[15].mxu0  ;;  %808 = vmatmul.mubr.bf16.gmra.mrb[8].mxu1 %v385_v37  ;;  %v378_v47 = vmax.f32 %v362_v40, 0.0 }
 0x117   :  { %v361_v46 = vadd.f32 %v686_v60, %v329_v45  ;;  %v376_v49 = vmax.f32 %v360_v42, 0.0 }
 0x118   :  { %v379_v48 = vmax.f32 %v363_v44, 0.0 }
 0x119   :  { %v377_v50 = vmax.f32 %v361_v46, 0.0 }
 0x11a   :  { %v387_v51 = vpack.c.bf16 %v379_v48, %v378_v47 }
 0x11b   :  { %v386_v52 = vpack.c.bf16 %v377_v50, %v376_v49  ;;  %v572_v50 = vld [vmem:[%s1166_s7] sm:$0xff] }
 0x11d   :  { %811 = vmatprep.mubr.bf16.mxu1 %v386_v52 }
 0x11e   :  { %812 = vmatmul.mubr.bf16.gmra.mrb[12].mxu1 %v387_v51  ;;  %v649_v51 = vlaneseq }
 0x11f   :  { %847 = vmatprep.mubr.msk.f32.mxu1 %vm931_vm3, %v932_v54 }
 0x120   :  { %v650_v52 = vshrl.u32 %v649_v51, 7 }
 0x122   :  { %v651_v54 = vsub.s32 0, %v650_v52 }
 0x124   :  { %v652_v56 = vrot.slane %v647_v55, %v651_v54 }
 0x1d9   :  { %v801_v58 = vpop.f32.mrb[0].mxu1 }
 0x1da   :  { %v502_v59 = vadd.f32 %v801_v58, %v687_v57  ;;  %v493_v60 = vpop.f32.mrb[1].mxu1 }
 0x1db   :  { %v494_v61 = vadd.f32 %v687_v57, %v493_v60  ;;  %v802_v62 = vpop.f32.mrb[2].mxu1 }
 0x1dc   :  { %v505_v63 = vadd.f32 %v802_v62, %v687_v57  ;;  %v496_v0 = vpop.f32.mrb[3].mxu1  ;;  %v558_v2 = vmax.f32 %v502_v59, 0.0 }
 0x1dd   :  { %v497_v1 = vadd.f32 %v687_v57, %v496_v0  ;;  %v556_v4 = vmax.f32 %v494_v61, 0.0 }
 0x1de   :  { %v559_v3 = vmax.f32 %v505_v63, 0.0 }
 0x1df   :  { %v557_v5 = vmax.f32 %v497_v1, 0.0 }
 0x1e0   :  { %v854_v6 = vpack.c.bf16 %v559_v3, %v558_v2 }
 0x1e1   :  { %v851_v7 = vpack.c.bf16 %v557_v5, %v556_v4  ;;  %v805_v8 = vpop.f32.mrb[4].mxu1 }
 0x1e2   :  { %v518_v9 = vadd.f32 %v805_v8, %v687_v57  ;;  %v509_v10 = vpop.f32.mrb[5].mxu1 }
 0x1e3   :  { %v510_v11 = vadd.f32 %v687_v57, %v509_v10  ;;  %v806_v12 = vpop.f32.mrb[6].mxu1  ;;  %852 = vmatpush3.bf16.xpose.msra.mxu1 %v851_v7 }
 0x1e4   :  { %v521_v13 = vadd.f32 %v806_v12, %v687_v57  ;;  %v512_v14 = vpop.f32.mrb[7].mxu1  ;;  %853 = vmatprep.subr.bf16.mxu1 %v930_v53  ;;  %v562_v16 = vmax.f32 %v518_v9, 0.0 }
 0x1e5   :  { %v513_v15 = vadd.f32 %v687_v57, %v512_v14  ;;  %v560_v18 = vmax.f32 %v510_v11, 0.0 }
 0x1e6   :  { %v563_v17 = vmax.f32 %v521_v13, 0.0 }
 0x1e7   :  { %v561_v19 = vmax.f32 %v513_v15, 0.0 }
 0x1e8   :  { %v860_v20 = vpack.c.bf16 %v563_v17, %v562_v16 }
 0x1e9   :  { %v857_v21 = vpack.c.bf16 %v561_v19, %v560_v18  ;;  %v809_v22 = vpop.f32.mrb[8].mxu1 }
 0x1ea   :  { %v534_v23 = vadd.f32 %v809_v22, %v687_v57  ;;  %v525_v24 = vpop.f32.mrb[9].mxu1 }
 0x1eb   :  { %v526_v25 = vadd.f32 %v687_v57, %v525_v24  ;;  %v810_v26 = vpop.f32.mrb[10].mxu1  ;;  %855 = vmatpush3.bf16.xpose.msra.mxu1 %v854_v6 }
 0x1ec   :  { %v537_v27 = vadd.f32 %v810_v26, %v687_v57  ;;  %v528_v28 = vpop.f32.mrb[11].mxu1  ;;  %856 = vmatprep.subr.bf16.mxu1 %v930_v53  ;;  %v566_v30 = vmax.f32 %v534_v23, 0.0 }
 0x1ed   :  { %v529_v29 = vadd.f32 %v687_v57, %v528_v28  ;;  %v564_v32 = vmax.f32 %v526_v25, 0.0 }
 0x1ee   :  { %v567_v31 = vmax.f32 %v537_v27, 0.0 }
 0x1ef   :  { %v565_v33 = vmax.f32 %v529_v29, 0.0 }
 0x1f0   :  { %v866_v34 = vpack.c.bf16 %v567_v31, %v566_v30 }
 0x1f1   :  { %v863_v35 = vpack.c.bf16 %v565_v33, %v564_v32  ;;  %v813_v36 = vpop.f32.mrb[12].mxu1 }
 0x1f2   :  { %v550_v37 = vadd.f32 %v813_v36, %v687_v57  ;;  %v541_v38 = vpop.f32.mrb[13].mxu1 }
 0x1f3   :  { %v542_v39 = vadd.f32 %v687_v57, %v541_v38  ;;  %v814_v40 = vpop.f32.mrb[14].mxu1  ;;  %858 = vmatpush3.bf16.xpose.msra.mxu1 %v857_v21 }
 0x1f4   :  { %v553_v41 = vadd.f32 %v814_v40, %v687_v57  ;;  %v544_v42 = vpop.f32.mrb[15].mxu1  ;;  %859 = vmatprep.subr.bf16.mxu1 %v930_v53  ;;  %v570_v44 = vmax.f32 %v550_v37, 0.0 }
 0x1f5   :  { %v545_v43 = vadd.f32 %v687_v57, %v544_v42  ;;  %v568_v46 = vmax.f32 %v542_v39, 0.0 }
 0x1f6   :  { %v571_v45 = vmax.f32 %v553_v41, 0.0 }
 0x1f7   :  { %v569_v47 = vmax.f32 %v545_v43, 0.0 }
 0x1f8   :  { %v872_v48 = vpack.c.bf16 %v571_v45, %v570_v44 }
 0x1f9   :  { %v869_v49 = vpack.c.bf16 %v569_v47, %v568_v46 }
 0x1fb   :  { %861 = vmatpush3.bf16.xpose.msra.mxu1 %v860_v20 }
 0x1fc   :  { %862 = vmatprep.subr.bf16.mxu1 %v930_v53 }
 0x203   :  { %864 = vmatpush3.bf16.xpose.msra.mxu1 %v863_v35 }
 0x204   :  { %865 = vmatprep.subr.bf16.mxu1 %v930_v53 }
 0x20b   :  { %867 = vmatpush3.bf16.xpose.msra.mxu1 %v866_v34 }
 0x20c   :  { %868 = vmatprep.subr.bf16.mxu1 %v930_v53 }
 0x213   :  { %870 = vmatpush3.bf16.xpose.msra.mxu1 %v869_v49 }
 0x214   :  { %871 = vmatprep.subr.bf16.mxu1 %v930_v53 }
 0x21b   :  { %873 = vmatpush3.bf16.xpose.msra.mxu1 %v872_v48 }
 0x222   :  { %848 = vmatmul.mubr.f32.vlgmr.msra.gmra.mrb[16].mxu1 %v572_v50 }
 0x2f5   :  { %v639_v57 = vpop.f32.mrb[16].mxu1 }
 0x2f6   :  { %v653_v58 = vadd.f32 %v652_v56, %v639_v57  ;;  %v849_v59 = vpop.f32.mrb[17].mxu1 }
 0x2f8   :  { %654 = vst [vmem:[#allocation3] sm:$0x1] %v653_v58 }
 0x2f9   :  { %917 = shalt.err (!%p914_p4)
}
 0x2fa   :  { %s918_s26 = scalar_lea.hbm %s1168_s9, 16 }
 0x2fb   :  { %p919_p5 = scmp.ne.s32.totalorder %s1168_s9, %s918_s26  ;;  %p922_p6 = scmp.lt.u32.totalorder %s918_s26, %s1168_s9 }
 0x2fd   :  { %p924_p7 = pnand %p922_p6, %p919_p5 }
 0x2ff   :  { %927 = shalt.err (!%p924_p7)
}
 0x300   :  { %664 = dma.vmem_to_hbm [thread:$0]  %s662_s22, 16, %s1168_s9, [#allocation4]  }
 0x301   :  { %928 = dma.done.wait [#allocation4], 16  }
 0x302   :  { %929 = vsyncadd [#allocation4], 4294967280 }
 0x303   :  { %668 = vsyncpa [#allocation4], 1 }

</bundles_post_ra>
